<compile_context>
chip_gen: v7x
topology: tpu7x:2x2x1
jax: 0.10.0
libtpu: 0.0.40
codegen_flags: <defaults>
</compile_context>

<pallas_src>
import functools

import jax
import jax.numpy as jnp
from jax.experimental import pallas as pl
from jax.experimental.pallas import tpu as pltpu

HIDDEN = 32
NUM_LAYERS = 2
MXU_DTYPE = jnp.bfloat16


def _round_up(x, m):
    return ((x + m - 1) // m) * m


def _cdiv(a, b):
    return -(-a // b)


def seqnet_kernel(x_ref,
                  w_l0_ref, b_l0_ref,
                  w_l1_ref, b_l1_ref,
                  wf1_ref, bf1_ref,
                  wf2_ref, bf2_ref,
                  wf3_ref, bf3_ref,
                  out_ref):
    H = HIDDEN
    h = x_ref[...].astype(MXU_DTYPE)                    # f32 HBM input -> bf16 MXU operand

    # LSTM stack, seq_len == 1, zero initial state:
    #   c_prev == 0 -> forget gate irrelevant (its columns were dropped from the packed W)
    #   h_prev == 0 -> W_hh term vanishes (b_hh folded into the packed bias)
    # Packed gate layout: [ i | g | o ]; i/o columns & biases are pre-scaled by 0.5 so a
    # single tanh pass yields sigmoid via 0.5*tanh(0.5*z) + 0.5 (one EUP pass, not three).
    for w_ref, b_ref in ((w_l0_ref, b_l0_ref), (w_l1_ref, b_l1_ref)):
        gates = jnp.dot(h, w_ref[...], preferred_element_type=jnp.float32) + b_ref[...]
        t = jnp.tanh(gates)
        i = 0.5 * t[:, 0 * H:1 * H] + 0.5               # == sigmoid(z_i)
        g = t[:, 1 * H:2 * H]                           # == tanh(z_g)
        o = 0.5 * t[:, 2 * H:3 * H] + 0.5               # == sigmoid(z_o)
        h = (o * jnp.tanh(i * g)).astype(MXU_DTYPE)     # c = i*g since c_prev == 0

    # MLP head: fc1 -> ReLU -> (dropout1 discarded in the PyTorch forward: no-op) -> fc2 -> ReLU -> fc3
    y = jnp.dot(h, wf1_ref[...], preferred_element_type=jnp.float32) + bf1_ref[...]
    y = jnp.maximum(y, 0.0).astype(MXU_DTYPE)
    y = jnp.dot(y, wf2_ref[...], preferred_element_type=jnp.float32) + bf2_ref[...]
    y = jnp.maximum(y, 0.0).astype(MXU_DTYPE)
    out_ref[...] = (jnp.dot(y, wf3_ref[...], preferred_element_type=jnp.float32)
                    + bf3_ref[...]).astype(out_ref.dtype)


def init_params(key, input_size, hidden, num_layers, out_class_num):
    """PyTorch-layout params: LSTM (w_ih (4H,in), b_ih (4H,), w_hh (4H,H), b_hh (4H,)),
    Linear (weight (out,in), bias (out,)). Gate order i,f,g,o as in torch.nn.LSTM."""
    keys = iter(jax.random.split(key, 4 * num_layers + 6))

    def u(shape, bound):
        return jax.random.uniform(next(keys), shape, jnp.float32, -bound, bound)

    bound_lstm = 1.0 / (hidden ** 0.5)
    lstm = []
    in_dim = input_size
    for _ in range(num_layers):
        w_ih = u((4 * hidden, in_dim), bound_lstm)
        w_hh = u((4 * hidden, hidden), bound_lstm)     # unused (h_prev == 0), kept for fidelity
        b_ih = u((4 * hidden,), bound_lstm)
        b_hh = u((4 * hidden,), bound_lstm)
        lstm.append((w_ih, b_ih, w_hh, b_hh))
        in_dim = hidden

    def linear(fan_out, fan_in):
        b = 1.0 / (fan_in ** 0.5)
        return u((fan_out, fan_in), b), u((fan_out,), b)

    fc = [linear(512, hidden), linear(128, 512), linear(out_class_num, 128)]
    return {"lstm": lstm, "fc": fc}


def prepare_kernel_params(params, c_pad):
    """PyTorch layout -> kernel layout:
       * LSTM: W packed (in, 3H), gate order [i|g|o] (forget gate dropped), bias = b_ih+b_hh;
         i/o columns & biases pre-scaled by 0.5 for the single-tanh sigmoid trick.
       * Linear: W transposed to (in, out); fc3 columns zero-padded to c_pad (lane-dense out).
       Matmul operands in bf16, biases in f32."""
    H = HIDDEN
    kp = []
    for (w_ih, b_ih, w_hh, b_hh) in params["lstm"]:
        bsum = b_ih + b_hh
        w_i, w_g, w_o = w_ih[0:H], w_ih[2 * H:3 * H], w_ih[3 * H:4 * H]
        b_i, b_g, b_o = bsum[0:H], bsum[2 * H:3 * H], bsum[3 * H:4 * H]
        w = jnp.concatenate([0.5 * w_i, w_g, 0.5 * w_o], axis=0).T      # (in, 3H)
        b = jnp.concatenate([0.5 * b_i, b_g, 0.5 * b_o]).reshape(1, 3 * H)
        kp += [w.astype(MXU_DTYPE), b.astype(jnp.float32)]

    for idx, (wf, bf) in enumerate(params["fc"]):
        w = wf.T                                        # (in, out)
        b = bf.reshape(1, -1)
        if idx == 2:                                    # fc3: pad classes -> lane-dense output
            w = jnp.pad(w, ((0, 0), (0, c_pad - w.shape[1])))
            b = jnp.pad(b, ((0, 0), (0, c_pad - b.shape[1])))
        kp += [w.astype(MXU_DTYPE), b.astype(jnp.float32)]
    return tuple(kp)


@functools.partial(jax.jit, static_argnames=("tile_n_max",))
def seqnet_forward(x, params, tile_n_max=1024):
    """x: (N, ...) — flattened to (N, input_size), matching x.view(len(x), 1, -1)."""
    n = x.shape[0]
    x2 = x.reshape(n, -1).astype(jnp.float32)
    f = x2.shape[1]
    in_size = params["lstm"][0][0].shape[1]
    if f != in_size:
        # Matches PyTorch: x.view(len(x), 1, -1) must flatten to the LSTM's input_size.
        raise ValueError(f"flattened input size {f} != LSTM input_size {in_size}")
    c = params["fc"][-1][0].shape[0]
    c_pad = _round_up(c, 128)

    # Tile selection: large sublane-aligned tiles; no batch padding (Pallas masks the partial
    # last block); force >= 2 grid steps once n > 512 so v7x megacore can split the batch.
    num_tiles = max(1, _cdiv(n, tile_n_max))
    if n > 512:
        num_tiles = max(num_tiles, 2)
    tile_n = _round_up(_cdiv(n, num_tiles), 8)
    grid = _cdiv(n, tile_n)

    kparams = prepare_kernel_params(params, c_pad)

    # Weights/biases: constant index_map -> stay VMEM-resident across grid steps.
    weight_specs = [pl.BlockSpec(p.shape, lambda i: (0, 0)) for p in kparams]
    in_specs = [pl.BlockSpec((tile_n, f), lambda i: (i, 0))] + weight_specs
    out_specs = pl.BlockSpec((tile_n, c_pad), lambda i: (i, 0))

    H = HIDDEN
    n_work = grid * tile_n
    flops = 2 * n_work * (f * 3 * H + H * 3 * H + H * 512 + 512 * 128 + 128 * c_pad)
    transcendentals = n_work * NUM_LAYERS * 4 * H       # one 3H tanh + one H tanh per layer
    bytes_accessed = (x2.size * 4 + n * c_pad * 4
                      + sum(int(p.size) * p.dtype.itemsize for p in kparams))

    out = pl.pallas_call(
        seqnet_kernel,
        out_shape=jax.ShapeDtypeStruct((n, c_pad), jnp.float32),
        grid=(grid,),
        in_specs=in_specs,
        out_specs=out_specs,
        compiler_params=pltpu.CompilerParams(
            dimension_semantics=("parallel",),
            vmem_limit_bytes=32 * 1024 * 1024),
        cost_estimate=pl.CostEstimate(flops=flops,
                                      transcendentals=transcendentals,
                                      bytes_accessed=bytes_accessed),
    )(x2, *kparams)
    return out[:, :c]


def reference_forward(x, params):
    """Pure-JAX f32 reference of the PyTorch forward (eval mode)."""
    n = x.shape[0]
    h = x.reshape(n, -1).astype(jnp.float32)
    H = HIDDEN
    for (w_ih, b_ih, w_hh, b_hh) in params["lstm"]:
        gates = h @ w_ih.T + b_ih + b_hh               # h_prev == 0 -> no w_hh term
        i = jax.nn.sigmoid(gates[:, 0 * H:1 * H])
        g = jnp.tanh(gates[:, 2 * H:3 * H])
        o = jax.nn.sigmoid(gates[:, 3 * H:4 * H])
        h = o * jnp.tanh(i * g)                        # c_prev == 0 -> forget gate irrelevant
    (w1, b1), (w2, b2), (w3, b3) = params["fc"]
    y = jnp.maximum(h @ w1.T + b1, 0.0)
    y = jnp.maximum(y @ w2.T + b2, 0.0)
    return y @ w3.T + b3


if __name__ == "__main__":
    key = jax.random.PRNGKey(0)
    k_x, k_p = jax.random.split(key)

    # keypoint sequence: N samples, 8 frames x 8 coords -> flattened input_size = 64
    N, T, K = 2, 8, 8
    input_size = T * K
    out_class_num = 10

    x = jax.random.normal(k_x, (N, T, K), jnp.float32)
    params = init_params(k_p, input_size, HIDDEN, NUM_LAYERS, out_class_num)

    out = seqnet_forward(x, params)
    jax.block_until_ready(out)

    ref = reference_forward(x, params)
    assert out.shape == (N, out_class_num), out.shape
    # bf16 MXU operands (f32 accumulation) -> loosened tolerance vs the pure-f32 reference.
    assert jnp.allclose(out, ref, rtol=3e-2, atol=3e-2), float(jnp.max(jnp.abs(out - ref)))

    print("KERNEL_OK")
</pallas_src>

<mosaic_0001>
module attributes {stable_mosaic.version = 11 : i64} {
  func.func @seqnet_kernel(%arg0: i32, %arg1: memref<8x64xf32, #tpu.memory_space<vmem>>, %arg2: memref<64x96xbf16, #tpu.memory_space<vmem>>, %arg3: memref<1x96xf32, #tpu.memory_space<vmem>>, %arg4: memref<32x96xbf16, #tpu.memory_space<vmem>>, %arg5: memref<1x96xf32, #tpu.memory_space<vmem>>, %arg6: memref<32x512xbf16, #tpu.memory_space<vmem>>, %arg7: memref<1x512xf32, #tpu.memory_space<vmem>>, %arg8: memref<512x128xbf16, #tpu.memory_space<vmem>>, %arg9: memref<1x128xf32, #tpu.memory_space<vmem>>, %arg10: memref<128x128xbf16, #tpu.memory_space<vmem>>, %arg11: memref<1x128xf32, #tpu.memory_space<vmem>>, %arg12: memref<8x128xf32, #tpu.memory_space<vmem>>) attributes {dimension_semantics = [#tpu.dimension_semantics<parallel>], iteration_bounds = array<i64: 1>, scalar_prefetch = 0 : i64, scratch_operands = 0 : i64, tpu.core_type = #tpu.core_type<tc>, window_params = [{transform_indices = @transform_0, window_bounds = array<i64: 8, 64>}, {pipeline_mode = #tpu.pipeline_mode<synchronous>, transform_indices = @transform_1, window_bounds = array<i64: 64, 96>}, {pipeline_mode = #tpu.pipeline_mode<synchronous>, transform_indices = @transform_2, window_bounds = array<i64: 1, 96>}, {pipeline_mode = #tpu.pipeline_mode<synchronous>, transform_indices = @transform_3, window_bounds = array<i64: 32, 96>}, {pipeline_mode = #tpu.pipeline_mode<synchronous>, transform_indices = @transform_4, window_bounds = array<i64: 1, 96>}, {pipeline_mode = #tpu.pipeline_mode<synchronous>, transform_indices = @transform_5, window_bounds = array<i64: 32, 512>}, {pipeline_mode = #tpu.pipeline_mode<synchronous>, transform_indices = @transform_6, window_bounds = array<i64: 1, 512>}, {pipeline_mode = #tpu.pipeline_mode<synchronous>, transform_indices = @transform_7, window_bounds = array<i64: 512, 128>}, {pipeline_mode = #tpu.pipeline_mode<synchronous>, transform_indices = @transform_8, window_bounds = array<i64: 1, 128>}, {pipeline_mode = #tpu.pipeline_mode<synchronous>, transform_indices = @transform_9, window_bounds = array<i64: 128, 128>}, {pipeline_mode = #tpu.pipeline_mode<synchronous>, transform_indices = @transform_10, window_bounds = array<i64: 1, 128>}, {transform_indices = @transform_11, window_bounds = array<i64: 8, 128>}]} {
    %c0 = arith.constant 0 : index
    %c0_0 = arith.constant 0 : index
    %0 = vector.load %arg1[%c0, %c0_0] : memref<8x64xf32, #tpu.memory_space<vmem>>, vector<8x64xf32>
    %1 = arith.truncf %0 : vector<8x64xf32> to vector<8x64xbf16>
    %c0_1 = arith.constant 0 : index
    %c0_2 = arith.constant 0 : index
    %2 = vector.load %arg2[%c0_1, %c0_2] : memref<64x96xbf16, #tpu.memory_space<vmem>>, vector<64x96xbf16>
    %cst = arith.constant dense<0.000000e+00> : vector<8x96xf32>
    %3 = tpu.matmul %1, %2, %cst {dimension_numbers = #tpu.dot_dimension_numbers<[1], [0], [0], [1], [0, 0, 1, 1], [], []>} : vector<8x64xbf16>, vector<64x96xbf16>, vector<8x96xf32> -> vector<8x96xf32>
    %c0_3 = arith.constant 0 : index
    %c0_4 = arith.constant 0 : index
    %4 = vector.load %arg3[%c0_3, %c0_4] : memref<1x96xf32, #tpu.memory_space<vmem>>, vector<1x96xf32>
    %5 = vector.broadcast %4 : vector<1x96xf32> to vector<8x96xf32>
    %6 = arith.addf %3, %5 : vector<8x96xf32>
    %7 = math.tanh %6 : vector<8x96xf32>
    %8 = vector.extract_strided_slice %7 {offsets = [0, 0], sizes = [8, 32], strides = [1, 1]} : vector<8x96xf32> to vector<8x32xf32>
    %cst_5 = arith.constant 5.000000e-01 : f32
    %9 = vector.broadcast %cst_5 : f32 to vector<8x32xf32>
    %10 = arith.mulf %9, %8 : vector<8x32xf32>
    %cst_6 = arith.constant 5.000000e-01 : f32
    %11 = vector.broadcast %cst_6 : f32 to vector<8x32xf32>
    %12 = arith.addf %10, %11 : vector<8x32xf32>
    %13 = vector.extract_strided_slice %7 {offsets = [0, 32], sizes = [8, 32], strides = [1, 1]} : vector<8x96xf32> to vector<8x32xf32>
    %14 = vector.extract_strided_slice %7 {offsets = [0, 64], sizes = [8, 32], strides = [1, 1]} : vector<8x96xf32> to vector<8x32xf32>
    %cst_7 = arith.constant 5.000000e-01 : f32
    %15 = vector.broadcast %cst_7 : f32 to vector<8x32xf32>
    %16 = arith.mulf %15, %14 : vector<8x32xf32>
    %cst_8 = arith.constant 5.000000e-01 : f32
    %17 = vector.broadcast %cst_8 : f32 to vector<8x32xf32>
    %18 = arith.addf %16, %17 : vector<8x32xf32>
    %19 = arith.mulf %12, %13 : vector<8x32xf32>
    %20 = math.tanh %19 : vector<8x32xf32>
    %21 = arith.mulf %18, %20 : vector<8x32xf32>
    %22 = arith.truncf %21 : vector<8x32xf32> to vector<8x32xbf16>
    %c0_9 = arith.constant 0 : index
    %c0_10 = arith.constant 0 : index
    %23 = vector.load %arg4[%c0_9, %c0_10] : memref<32x96xbf16, #tpu.memory_space<vmem>>, vector<32x96xbf16>
    %cst_11 = arith.constant dense<0.000000e+00> : vector<8x96xf32>
    %24 = tpu.matmul %22, %23, %cst_11 {dimension_numbers = #tpu.dot_dimension_numbers<[1], [0], [0], [1], [0, 0, 1, 1], [], []>} : vector<8x32xbf16>, vector<32x96xbf16>, vector<8x96xf32> -> vector<8x96xf32>
    %c0_12 = arith.constant 0 : index
    %c0_13 = arith.constant 0 : index
    %25 = vector.load %arg5[%c0_12, %c0_13] : memref<1x96xf32, #tpu.memory_space<vmem>>, vector<1x96xf32>
    %26 = vector.broadcast %25 : vector<1x96xf32> to vector<8x96xf32>
    %27 = arith.addf %24, %26 : vector<8x96xf32>
    %28 = math.tanh %27 : vector<8x96xf32>
    %29 = vector.extract_strided_slice %28 {offsets = [0, 0], sizes = [8, 32], strides = [1, 1]} : vector<8x96xf32> to vector<8x32xf32>
    %cst_14 = arith.constant 5.000000e-01 : f32
    %30 = vector.broadcast %cst_14 : f32 to vector<8x32xf32>
    %31 = arith.mulf %30, %29 : vector<8x32xf32>
    %cst_15 = arith.constant 5.000000e-01 : f32
    %32 = vector.broadcast %cst_15 : f32 to vector<8x32xf32>
    %33 = arith.addf %31, %32 : vector<8x32xf32>
    %34 = vector.extract_strided_slice %28 {offsets = [0, 32], sizes = [8, 32], strides = [1, 1]} : vector<8x96xf32> to vector<8x32xf32>
    %35 = vector.extract_strided_slice %28 {offsets = [0, 64], sizes = [8, 32], strides = [1, 1]} : vector<8x96xf32> to vector<8x32xf32>
    %cst_16 = arith.constant 5.000000e-01 : f32
    %36 = vector.broadcast %cst_16 : f32 to vector<8x32xf32>
    %37 = arith.mulf %36, %35 : vector<8x32xf32>
    %cst_17 = arith.constant 5.000000e-01 : f32
    %38 = vector.broadcast %cst_17 : f32 to vector<8x32xf32>
    %39 = arith.addf %37, %38 : vector<8x32xf32>
    %40 = arith.mulf %33, %34 : vector<8x32xf32>
    %41 = math.tanh %40 : vector<8x32xf32>
    %42 = arith.mulf %39, %41 : vector<8x32xf32>
    %43 = arith.truncf %42 : vector<8x32xf32> to vector<8x32xbf16>
    %c0_18 = arith.constant 0 : index
    %c0_19 = arith.constant 0 : index
    %44 = vector.load %arg6[%c0_18, %c0_19] : memref<32x512xbf16, #tpu.memory_space<vmem>>, vector<32x512xbf16>
    %cst_20 = arith.constant dense<0.000000e+00> : vector<8x512xf32>
    %45 = tpu.matmul %43, %44, %cst_20 {dimension_numbers = #tpu.dot_dimension_numbers<[1], [0], [0], [1], [0, 0, 1, 1], [], []>} : vector<8x32xbf16>, vector<32x512xbf16>, vector<8x512xf32> -> vector<8x512xf32>
    %c0_21 = arith.constant 0 : index
    %c0_22 = arith.constant 0 : index
    %46 = vector.load %arg7[%c0_21, %c0_22] : memref<1x512xf32, #tpu.memory_space<vmem>>, vector<1x512xf32>
    %47 = vector.broadcast %46 : vector<1x512xf32> to vector<8x512xf32>
    %48 = arith.addf %45, %47 : vector<8x512xf32>
    %cst_23 = arith.constant 0.000000e+00 : f32
    %49 = vector.broadcast %cst_23 : f32 to vector<8x512xf32>
    %50 = arith.maximumf %48, %49 : vector<8x512xf32>
    %51 = arith.truncf %50 : vector<8x512xf32> to vector<8x512xbf16>
    %c0_24 = arith.constant 0 : index
    %c0_25 = arith.constant 0 : index
    %52 = vector.load %arg8[%c0_24, %c0_25] : memref<512x128xbf16, #tpu.memory_space<vmem>>, vector<512x128xbf16>
    %cst_26 = arith.constant dense<0.000000e+00> : vector<8x128xf32>
    %53 = tpu.matmul %51, %52, %cst_26 {dimension_numbers = #tpu.dot_dimension_numbers<[1], [0], [0], [1], [0, 0, 1, 1], [], []>} : vector<8x512xbf16>, vector<512x128xbf16>, vector<8x128xf32> -> vector<8x128xf32>
    %c0_27 = arith.constant 0 : index
    %c0_28 = arith.constant 0 : index
    %54 = vector.load %arg9[%c0_27, %c0_28] : memref<1x128xf32, #tpu.memory_space<vmem>>, vector<1x128xf32>
    %55 = vector.broadcast %54 : vector<1x128xf32> to vector<8x128xf32>
    %56 = arith.addf %53, %55 : vector<8x128xf32>
    %cst_29 = arith.constant 0.000000e+00 : f32
    %57 = vector.broadcast %cst_29 : f32 to vector<8x128xf32>
    %58 = arith.maximumf %56, %57 : vector<8x128xf32>
    %59 = arith.truncf %58 : vector<8x128xf32> to vector<8x128xbf16>
    %c0_30 = arith.constant 0 : index
    %c0_31 = arith.constant 0 : index
    %60 = vector.load %arg10[%c0_30, %c0_31] : memref<128x128xbf16, #tpu.memory_space<vmem>>, vector<128x128xbf16>
    %cst_32 = arith.constant dense<0.000000e+00> : vector<8x128xf32>
    %61 = tpu.matmul %59, %60, %cst_32 {dimension_numbers = #tpu.dot_dimension_numbers<[1], [0], [0], [1], [0, 0, 1, 1], [], []>} : vector<8x128xbf16>, vector<128x128xbf16>, vector<8x128xf32> -> vector<8x128xf32>
    %c0_33 = arith.constant 0 : index
    %c0_34 = arith.constant 0 : index
    %62 = vector.load %arg11[%c0_33, %c0_34] : memref<1x128xf32, #tpu.memory_space<vmem>>, vector<1x128xf32>
    %63 = vector.broadcast %62 : vector<1x128xf32> to vector<8x128xf32>
    %64 = arith.addf %61, %63 : vector<8x128xf32>
    %c0_35 = arith.constant 0 : index
    %c0_36 = arith.constant 0 : index
    %65 = vector.load %arg12[%c0_35, %c0_36] : memref<8x128xf32, #tpu.memory_space<vmem>>, vector<8x128xf32>
    tpu.vector_store %arg12[%c0_35, %c0_36], %64 {strides = array<i32>} : memref<8x128xf32, #tpu.memory_space<vmem>>, vector<8x128xf32>,
    return
  }
  func.func @transform_0(%arg0: i32) -> (i32, i32) {
    %c0_i32 = arith.constant 0 : i32
    %c0_i32_0 = arith.constant 0 : i32
    return %arg0, %c0_i32 : i32, i32
  }
  func.func @transform_1(%arg0: i32) -> (i32, i32) {
    %c0_i32 = arith.constant 0 : i32
    %c0_i32_0 = arith.constant 0 : i32
    %c0_i32_1 = arith.constant 0 : i32
    return %c0_i32, %c0_i32_0 : i32, i32
  }
  func.func @transform_2(%arg0: i32) -> (i32, i32) {
    %c0_i32 = arith.constant 0 : i32
    %c0_i32_0 = arith.constant 0 : i32
    %c0_i32_1 = arith.constant 0 : i32
    return %c0_i32, %c0_i32_0 : i32, i32
  }
  func.func @transform_3(%arg0: i32) -> (i32, i32) {
    %c0_i32 = arith.constant 0 : i32
    %c0_i32_0 = arith.constant 0 : i32
    %c0_i32_1 = arith.constant 0 : i32
    return %c0_i32, %c0_i32_0 : i32, i32
  }
  func.func @transform_4(%arg0: i32) -> (i32, i32) {
    %c0_i32 = arith.constant 0 : i32
    %c0_i32_0 = arith.constant 0 : i32
    %c0_i32_1 = arith.constant 0 : i32
    return %c0_i32, %c0_i32_0 : i32, i32
  }
  func.func @transform_5(%arg0: i32) -> (i32, i32) {
    %c0_i32 = arith.constant 0 : i32
    %c0_i32_0 = arith.constant 0 : i32
    %c0_i32_1 = arith.constant 0 : i32
    return %c0_i32, %c0_i32_0 : i32, i32
  }
  func.func @transform_6(%arg0: i32) -> (i32, i32) {
    %c0_i32 = arith.constant 0 : i32
    %c0_i32_0 = arith.constant 0 : i32
    %c0_i32_1 = arith.constant 0 : i32
    return %c0_i32, %c0_i32_0 : i32, i32
  }
  func.func @transform_7(%arg0: i32) -> (i32, i32) {
    %c0_i32 = arith.constant 0 : i32
    %c0_i32_0 = arith.constant 0 : i32
    %c0_i32_1 = arith.constant 0 : i32
    return %c0_i32, %c0_i32_0 : i32, i32
  }
  func.func @transform_8(%arg0: i32) -> (i32, i32) {
    %c0_i32 = arith.constant 0 : i32
    %c0_i32_0 = arith.constant 0 : i32
    %c0_i32_1 = arith.constant 0 : i32
    return %c0_i32, %c0_i32_0 : i32, i32
  }
  func.func @transform_9(%arg0: i32) -> (i32, i32) {
    %c0_i32 = arith.constant 0 : i32
    %c0_i32_0 = arith.constant 0 : i32
    %c0_i32_1 = arith.constant 0 : i32
    return %c0_i32, %c0_i32_0 : i32, i32
  }
  func.func @transform_10(%arg0: i32) -> (i32, i32) {
    %c0_i32 = arith.constant 0 : i32
    %c0_i32_0 = arith.constant 0 : i32
    %c0_i32_1 = arith.constant 0 : i32
    return %c0_i32, %c0_i32_0 : i32, i32
  }
  func.func @transform_11(%arg0: i32) -> (i32, i32) {
    %c0_i32 = arith.constant 0 : i32
    %c0_i32_0 = arith.constant 0 : i32
    return %arg0, %c0_i32 : i32, i32
  }
}

</mosaic_0001>

<bundles_post_ra>
// kernel: seqnet_forward.1
= control target key start
LH: loop header
LB: loop body
LE: loop exit
PB: predicated region body
PF: predicated region fallthrough
CT: control target
= control target key end

     0   :  { %16 = vsyncpa [#allocation3], 0  ;;  %v1125_v1 = vmov 0.0   ;;  %vm1126_vm0 = vmmov 0   ;;  %vm81_vm1 = vcmask 523264   ;;  %s1128_s12 = smov 64   ;;  %s1412_s0 = inlined_call_operand.vmem [shape: f32[2,64], index: 0, kind: input, shape index: {}]   ;;  %s1413_s1 = inlined_call_operand.vmem [shape: bf16[64,96], index: 1, kind: input, shape index: {}]   ;;  %s1414_s2 = inlined_call_operand.vmem [shape: f32[1,96], index: 2, kind: input, shape index: {}]   ;;  %s1415_s3 = inlined_call_operand.vmem [shape: bf16[32,96], index: 3, kind: input, shape index: {}]   ;;  %s1416_s4 = inlined_call_operand.vmem [shape: f32[1,96], index: 4, kind: input, shape index: {}]   ;;  %s1417_s5 = inlined_call_operand.vmem [shape: bf16[32,512], index: 5, kind: input, shape index: {}]   ;;  %s1418_s6 = inlined_call_operand.vmem [shape: f32[1,512], index: 6, kind: input, shape index: {}]   ;;  %s1419_s7 = inlined_call_operand.vmem [shape: bf16[512,128], index: 7, kind: input, shape index: {}]   ;;  %s1420_s8 = inlined_call_operand.vmem [shape: f32[1,128], index: 8, kind: input, shape index: {}]   ;;  %s1421_s9 = inlined_call_operand.vmem [shape: bf16[128,128], index: 9, kind: input, shape index: {}]   ;;  %s1422_s10 = inlined_call_operand.vmem [shape: f32[1,128], index: 10, kind: input, shape index: {}]   ;;  %s1423_s11 = inlined_call_operand.hbm [shape: f32[2,128], index: 11, kind: output, shape index: {}]  }
   0x1   :  { %v1035_v0 = vld [vmem:[%s1413_s1] sm:$0xff]   ;;  %987 = vmatprep.subr.bf16.mxu0 %v1125_v1  ;;  %v1036_v2 = vld [vmem:[%s1413_s1 + $0x8] sm:$0xff]   ;;  %995 = vmatprep.mubr.msk.bf16.mxu0 %vm1126_vm0, %v1125_v1  ;;  %v1037_v3 = vld [vmem:[%s1413_s1 + $0x10] sm:$0xff]   ;;  %vm166_vm2 = vcmask 261120   ;;  %v1129_v44 = vmov 0  }
   0x2   :  { %988 = vmatpush3.bf16.msra.mxu0 %v1035_v0  ;;  %v1038_v4 = vld [vmem:[%s1413_s1 + $0x18] sm:$0xff]   ;;  %v40_v5 = vld [vmem:[%s1412_s0] sm:$0xff]  ;;  %s1127_s0 = smov 96   ;;  %v1040_v19 = vld [vmem:[%s1415_s3 + $0x8] sm:$0xff]   ;;  %333 = vmatprep.mubr.bf16.mxu1 %v1129_v44 }
   0x3   :  { %989 = vmatprep.subr.bf16.mxu0 %v1125_v1  ;;  %v41_v6 = vpack.c.bf16 %v40_v5, %v40_v5  ;;  %v864_v7 = vld [vmem:[%s1414_s2] ss:$0 sm:$0xff]  ;;  %v1041_v36 = vld [vmem:[%s1417_s5 + $0x4] ss:$16 sps:$4 sm:$0xff]   ;;  %v1043_v37 = vld [vmem:[%s1417_s5 + $0x8] ss:$16 sps:$4 sm:$0xff]  }
   0x4   :  { %v1039_v18 = vld [vmem:[%s1415_s3] sm:$0xff]   ;;  %v1045_v38 = vld [vmem:[%s1417_s5 + $0xc] ss:$16 sps:$4 sm:$0xff]   ;;  %301 = vmatprep.subr.bf16.mxu1 %v1041_v36  ;;  %v1049_v42 = vld [vmem:[%s1417_s5 + $0x28] ss:$16 sps:$4 sm:$0xff]  }
   0x5   :  { %v870_v25 = vld [vmem:[%s1416_s4] ss:$0 sm:$0xff]  ;;  %v1047_v40 = vld [vmem:[%s1417_s5 + $0x24] ss:$16 sps:$4 sm:$0xff]   ;;  %v1051_v41 = vld [vmem:[%s1417_s5 + $0x2c] ss:$16 sps:$4 sm:$0xff]  }
   0x6   :  { %990 = vmatpush3.bf16.msra.mxu0 %v1036_v2  ;;  %v1046_v39 = vld [vmem:[%s1417_s5] ss:$16 sps:$4 sm:$0xff]   ;;  %v1057_v53 = vld [vmem:[%s1419_s7 + $0x48] sm:$0xff]   ;;  %v1065_v62 = vld [vmem:[%s1419_s7 + $0x58] sm:$0xff]  }
   0x7   :  { %991 = vmatprep.subr.bf16.mxu0 %v1125_v1  ;;  %302 = vmatpush1.bf16.msra.mxu1 %v1046_v39  ;;  %v1052_v43 = vld [vmem:[%s1417_s5 + $0x20] ss:$16 sps:$4 sm:$0xff]   ;;  %v1058_v54 = vld [vmem:[%s1419_s7 + $0xc8] sm:$0xff]   ;;  %v1066_v63 = vld [vmem:[%s1419_s7 + $0xd8] sm:$0xff]  }
   0x8   :  { %303 = vmatprep.subr.bf16.mxu1 %v1047_v40  ;;  %v1053_v46 = vld [vmem:[%s1419_s7 + $0x40] sm:$0xff]   ;;  %v1059_v56 = vld [vmem:[%s1419_s7 + $0x8] sm:$0xff]   ;;  %v1061_v58 = vld [vmem:[%s1419_s7 + $0x50] sm:$0xff]  }
   0x9   :  { %v1054_v47 = vld [vmem:[%s1419_s7 + $0xc0] sm:$0xff]   ;;  %v1060_v57 = vld [vmem:[%s1419_s7 + $0x88] sm:$0xff]   ;;  %v1062_v59 = vld [vmem:[%s1419_s7 + $0xd0] sm:$0xff]  }
   0xa   :  { %992 = vmatpush3.bf16.msra.mxu0 %v1037_v3  ;;  %v1055_v51 = vld [vmem:[%s1419_s7] sm:$0xff]   ;;  %v1063_v60 = vld [vmem:[%s1419_s7 + $0x10] sm:$0xff]   ;;  %v1067_v0 = vld [vmem:[%s1419_s7 + $0x18] sm:$0xff]  }
   0xb   :  { %993 = vmatprep.subr.bf16.mxu0 %v1125_v1  ;;  %304 = vmatpush1.bf16.msra.mxu1 %v1052_v43  ;;  %v1056_v52 = vld [vmem:[%s1419_s7 + $0x80] sm:$0xff]   ;;  %v1064_v61 = vld [vmem:[%s1419_s7 + $0x90] sm:$0xff]   ;;  %v1068_v2 = vld [vmem:[%s1419_s7 + $0x98] sm:$0xff]  }
   0xc   :  { %934 = vmatprep.subr.bf16.mxu1 %v1053_v46  ;;  %v1069_v3 = vld [vmem:[%s1419_s7 + $0x60] sm:$0xff]  }
   0xd   :  { %v1071_v5 = vld [vmem:[%s1419_s7 + $0x20] sm:$0xff]  }
   0xe   :  { %994 = vmatpush3.bf16.msra.mxu0 %v1038_v4  ;;  %v1070_v4 = vld [vmem:[%s1419_s7 + $0xe0] sm:$0xff]  }
   0xf   :  { %999 = vmatprep.subr.bf16.mxu0 %v1125_v1 }
  0x11   :  { %996 = vmatmul.mubr.msk.bf16.vlgmr.msra.gmra.mrb[0].mxu0 %vm81_vm1, %v41_v6  ;;  %v1072_v6 = vld [vmem:[%s1419_s7 + $0xa0] sm:$0xff]  }
  0x12   :  { %1003 = vmatprep.mubr.msk.bf16.mxu0 %vm1126_vm0, %v1125_v1  ;;  %1000 = vmatpush3.bf16.msra.mxu0 %v1039_v18  ;;  %v1084_v18 = vld [vmem:[%s1419_s7 + $0xb8] sm:$0xff]  }
  0x13   :  { %1001 = vmatprep.subr.bf16.mxu0 %v1125_v1 }
  0x16   :  { %1002 = vmatpush3.bf16.msra.mxu0 %v1040_v19  ;;  %v235_v19 = vlaneseq }
  0x17   :  { %342 = vmatprep.subr.bf16.mxu0 %v1045_v38 }
  0xe4   :  { %v119_v8 = vpop.f32.mrb[0].mxu0 }
  0xe5   :  { %v120_v9 = vadd.f32 %v864_v7, %v119_v8  ;;  %v997_v10 = vpop.f32.mrb[1].mxu0  ;;  %v1073_v7 = vld [vmem:[%s1419_s7 + $0x68] sm:$0xff]  }
  0xe6   :  { %v122_v11 = vpop.f32.mrb[2].mxu0  ;;  %v1074_v8 = vld [vmem:[%s1419_s7 + $0xe8] sm:$0xff]  }
  0xe7   :  { %1093 = vtanh.f32 %v120_v9  ;;  %v998_v12 = vpop.f32.mrb[3].mxu0  ;;  %v1075_v9 = vld [vmem:[%s1419_s7 + $0x28] sm:$0xff]   ;;  %v1077_v11 = vld [vmem:[%s1419_s7 + $0x70] sm:$0xff]  }
  0xe8   :  { %v1076_v10 = vld [vmem:[%s1419_s7 + $0xa8] sm:$0xff]   ;;  %v1078_v12 = vld [vmem:[%s1419_s7 + $0xf0] sm:$0xff]  }
  0xf1   :  { %v1094_v13 = vpop.eup %1093 }
  0xf2   :  { %129 = vrot.lane.b32.xlu0 %v1094_v13, %s1127_s0  ;;  %v126_v14 = vmul.f32 0.5, %v1094_v13  ;;  %v1079_v13 = vld [vmem:[%s1419_s7 + $0x30] sm:$0xff]  }
  0xf4   :  { %v127_v15 = vadd.f32 0.5, %v126_v14  ;;  %v1080_v14 = vld [vmem:[%s1419_s7 + $0xb0] sm:$0xff]  }
 0x164   :  { %v130_v16 = vpop.permute.xlu0 %129 }
 0x165   :  { %v132_v17 = vmul.f32 %v130_v16, %v127_v15  ;;  %v1082_v16 = vld [vmem:[%s1419_s7 + $0xf8] sm:$0xff]  }
 0x167   :  { %1095 = vtanh.f32 %v132_v17  ;;  %v1083_v17 = vld [vmem:[%s1419_s7 + $0x38] sm:$0xff]  }
 0x171   :  { %v1096_v20 = vpop.eup %1095 }
 0x172   :  { %135 = vrot.lane.b32.xlu0 %v1096_v20, %s1128_s12  ;;  %v236_v20 = vshrl.u32 %v235_v19, 7 }
 0x1e4   :  { %v136_v21 = vpop.permute.xlu0 %135 }
 0x1e5   :  { %v138_v22 = vmul.f32 %v136_v21, %v127_v15  ;;  %v1081_v15 = vld [vmem:[%s1419_s7 + $0x78] sm:$0xff]   ;;  %v237_v21 = vsub.s32 0, %v236_v20 }
 0x1e7   :  { %v139_v23 = vpack.c.bf16 %v138_v22, %v138_v22  ;;  %v245_v22 = vsub.s32 2, %v236_v20 }
 0x1e9   :  { %152 = vrot.lane.b32.xlu1 %v139_v23, %s1128_s12  ;;  %v233_v23 = vld [vmem:[%s1418_s6] sm:$0xf] }
 0x25b   :  { %v153_v24 = vpop.permute.xlu1 %152 }
 0x25c   :  { %1004 = vmatmul.mubr.msk.bf16.vlgmr.msra.gmra.mrb[4].mxu0 %vm166_vm2, %v153_v24  ;;  %v241_v24 = vsub.s32 1, %v236_v20 }
 0x25d   :  { %343 = vmatpush1.bf16.msra.mxu0 %v1043_v37  ;;  %374 = vmatprep.mubr.bf16.mxu0 %v1129_v44 }
 0x25e   :  { %344 = vmatprep.subr.bf16.mxu0 %v1051_v41 }
 0x261   :  { %345 = vmatpush1.bf16.msra.mxu0 %v1049_v42 }
 0x262   :  { %956 = vmatprep.subr.bf16.mxu0 %v1054_v47 }
 0x32f   :  { %v204_v26 = vpop.f32.mrb[4].mxu0 }
 0x330   :  { %v205_v27 = vadd.f32 %v870_v25, %v204_v26  ;;  %v1005_v28 = vpop.f32.mrb[5].mxu0  ;;  %v249_v25 = vsub.s32 3, %v236_v20  ;;  %v238_v26 = vrot.slane %v233_v23, %v237_v21 }
 0x331   :  { %v207_v29 = vpop.f32.mrb[6].mxu0  ;;  %v242_v28 = vrot.slane %v233_v23, %v241_v24 }
 0x332   :  { %1097 = vtanh.f32 %v205_v27  ;;  %v1006_v30 = vpop.f32.mrb[7].mxu0  ;;  %v246_v27 = vrot.slane %v233_v23, %v245_v22  ;;  %v250_v29 = vrot.slane %v233_v23, %v249_v25 }
 0x33c   :  { %v1098_v31 = vpop.eup %1097 }
 0x33d   :  { %214 = vrot.lane.b32.xlu1 %v1098_v31, %s1127_s0  ;;  %v211_v32 = vmul.f32 0.5, %v1098_v31 }
 0x33f   :  { %v212_v33 = vadd.f32 0.5, %v211_v32 }
 0x3af   :  { %v215_v34 = vpop.permute.xlu1 %214 }
 0x3b0   :  { %v217_v35 = vmul.f32 %v215_v34, %v212_v33 }
 0x3b2   :  { %1099 = vtanh.f32 %v217_v35 }
 0x3bc   :  { %v1100_v45 = vpop.eup %1099 }
 0x3bd   :  { %220 = vrot.lane.b32.xlu0 %v1100_v45, %s1128_s12 }
 0x42f   :  { %v221_v48 = vpop.permute.xlu0 %220 }
 0x430   :  { %v223_v49 = vmul.f32 %v221_v48, %v212_v33  ;;  %v1085_v48 = vld [vmem:[%s1421_s9] sm:$0xff]  }
 0x432   :  { %v224_v50 = vpack.c.bf16 %v223_v49, %v223_v49 }
 0x434   :  { %256 = vrot.lane.b32.xlu1 %v224_v50, %s1128_s12 }
 0x4a6   :  { %v257_v55 = vpop.permute.xlu1 %256 }
 0x4a7   :  { %882 = vmatmul.mubr.msk.bf16.vlgmr.msra.gmra.mrb[0].mxu1 %vm166_vm2, %v257_v55  ;;  %883 = vmatmul.mubr.msk.bf16.vlgmr.msra.gmra.mrb[8].mxu0 %vm166_vm2, %v257_v55  ;;  %v1090_v55 = vld [vmem:[%s1421_s9 + $0x28] sm:$0xff]  }
 0x4a8   :  { %935 = vmatpush3.bf16.msra.mxu1 %v1055_v51  ;;  %957 = vmatpush3.bf16.msra.mxu0 %v1056_v52  ;;  %v1086_v51 = vld [vmem:[%s1421_s9 + $0x8] sm:$0xff]   ;;  %v1087_v52 = vld [vmem:[%s1421_s9 + $0x10] sm:$0xff]  }
 0x4a9   :  { %936 = vmatprep.subr.bf16.mxu1 %v1057_v53  ;;  %958 = vmatprep.subr.bf16.mxu0 %v1058_v54  ;;  %v1088_v53 = vld [vmem:[%s1421_s9 + $0x18] sm:$0xff]   ;;  %v1089_v54 = vld [vmem:[%s1421_s9 + $0x20] sm:$0xff]  }
 0x4ac   :  { %937 = vmatpush3.bf16.msra.mxu1 %v1059_v56  ;;  %959 = vmatpush3.bf16.msra.mxu0 %v1060_v57  ;;  %v1091_v56 = vld [vmem:[%s1421_s9 + $0x30] sm:$0xff]   ;;  %v1092_v57 = vld [vmem:[%s1421_s9 + $0x38] sm:$0xff]  }
 0x4ad   :  { %938 = vmatprep.subr.bf16.mxu1 %v1061_v58  ;;  %960 = vmatprep.subr.bf16.mxu0 %v1062_v59 }
 0x4b0   :  { %939 = vmatpush3.bf16.msra.mxu1 %v1063_v60  ;;  %961 = vmatpush3.bf16.msra.mxu0 %v1064_v61  ;;  %v884_v60 = vld [vmem:[%s1420_s8] ss:$0 sm:$0xff] }
 0x4b1   :  { %940 = vmatprep.subr.bf16.mxu1 %v1065_v62  ;;  %962 = vmatprep.subr.bf16.mxu0 %v1066_v63 }
 0x4b4   :  { %941 = vmatpush3.bf16.msra.mxu1 %v1067_v0  ;;  %963 = vmatpush3.bf16.msra.mxu0 %v1068_v2 }
 0x4b5   :  { %942 = vmatprep.subr.bf16.mxu1 %v1069_v3  ;;  %964 = vmatprep.subr.bf16.mxu0 %v1070_v4 }
 0x4b8   :  { %943 = vmatpush3.bf16.msra.mxu1 %v1071_v5  ;;  %965 = vmatpush3.bf16.msra.mxu0 %v1072_v6 }
 0x4b9   :  { %944 = vmatprep.subr.bf16.mxu1 %v1073_v7  ;;  %966 = vmatprep.subr.bf16.mxu0 %v1074_v8 }
 0x4bc   :  { %945 = vmatpush3.bf16.msra.mxu1 %v1075_v9  ;;  %967 = vmatpush3.bf16.msra.mxu0 %v1076_v10  ;;  %v917_v9 = vld [vmem:[%s1422_s10] ss:$0 sm:$0xff] }
 0x4bd   :  { %946 = vmatprep.subr.bf16.mxu1 %v1077_v11  ;;  %968 = vmatprep.subr.bf16.mxu0 %v1078_v12 }
 0x4c0   :  { %947 = vmatpush3.bf16.msra.mxu1 %v1079_v13  ;;  %969 = vmatpush3.bf16.msra.mxu0 %v1080_v14 }
 0x4c1   :  { %948 = vmatprep.subr.bf16.mxu1 %v1081_v15  ;;  %970 = vmatprep.subr.bf16.mxu0 %v1082_v16 }
 0x4c4   :  { %949 = vmatpush3.bf16.msra.mxu1 %v1083_v17  ;;  %971 = vmatpush3.bf16.msra.mxu0 %v1084_v18 }
 0x4c5   :  { %1007 = vmatprep.subr.bf16.mxu1 %v1125_v1 }
 0x57a   :  { %v335_v30 = vpop.f32.mrb[0].mxu1  ;;  %v376_v31 = vpop.f32.mrb[8].mxu0 }
 0x57b   :  { %v336_v32 = vadd.f32 %v335_v30, %v238_v26  ;;  %v377_v33 = vadd.f32 %v376_v31, %v246_v27  ;;  %v337_v34 = vpop.f32.mrb[1].mxu1  ;;  %v378_v35 = vpop.f32.mrb[9].mxu0 }
 0x57c   :  { %v338_v36 = vadd.f32 %v337_v34, %v242_v28  ;;  %v379_v37 = vadd.f32 %v378_v35, %v250_v29  ;;  %v339_v38 = vpop.f32.mrb[2].mxu1  ;;  %v380_v39 = vpop.f32.mrb[10].mxu0 }
 0x57d   :  { %v383_v40 = vmax.f32 %v336_v32, 0.0  ;;  %v385_v41 = vmax.f32 %v377_v33, 0.0  ;;  %v340_v42 = vpop.f32.mrb[3].mxu1  ;;  %v381_v43 = vpop.f32.mrb[11].mxu0 }
 0x57e   :  { %v384_v44 = vmax.f32 %v338_v36, 0.0  ;;  %v386_v45 = vmax.f32 %v379_v37, 0.0 }
 0x57f   :  { %v387_v49 = vpack.c.bf16 %v383_v40, %v383_v40  ;;  %v389_v50 = vpack.c.bf16 %v385_v41, %v385_v41 }
 0x580   :  { %v388_v46 = vpack.c.bf16 %v384_v44, %v384_v44  ;;  %v390_v47 = vpack.c.bf16 %v386_v45, %v386_v45 }
 0x582   :  { %686 = vmatprep.mubr.bf16.mxu1 %v388_v46  ;;  %726 = vmatprep.mubr.bf16.mxu0 %v390_v47 }
 0x583   :  { %687 = vmatmul.mubr.bf16.vlgmr.msra.gmra.mrb[4].mxu1 %v387_v49  ;;  %727 = vmatmul.mubr.bf16.vlgmr.msra.gmra.mrb[12].mxu0 %v389_v50 }
 0x584   :  { %1008 = vmatpush3.bf16.msra.mxu1 %v1085_v48  ;;  %1023 = vmatprep.mubr.msk.bf16.mxu1 %vm1126_vm0, %v1125_v1 }
 0x585   :  { %1009 = vmatprep.subr.bf16.mxu1 %v1125_v1 }
 0x588   :  { %1010 = vmatpush3.bf16.msra.mxu1 %v1086_v51 }
 0x589   :  { %1011 = vmatprep.subr.bf16.mxu1 %v1125_v1 }
 0x58c   :  { %1012 = vmatpush3.bf16.msra.mxu1 %v1087_v52 }
 0x58d   :  { %1013 = vmatprep.subr.bf16.mxu1 %v1125_v1 }
 0x590   :  { %1014 = vmatpush3.bf16.msra.mxu1 %v1088_v53 }
 0x591   :  { %1015 = vmatprep.subr.bf16.mxu1 %v1125_v1 }
 0x594   :  { %1016 = vmatpush3.bf16.msra.mxu1 %v1089_v54 }
 0x595   :  { %1017 = vmatprep.subr.bf16.mxu1 %v1125_v1 }
 0x598   :  { %1018 = vmatpush3.bf16.msra.mxu1 %v1090_v55 }
 0x599   :  { %1019 = vmatprep.subr.bf16.mxu1 %v1125_v1 }
 0x59c   :  { %1020 = vmatpush3.bf16.msra.mxu1 %v1091_v56 }
 0x59d   :  { %1021 = vmatprep.subr.bf16.mxu1 %v1125_v1 }
 0x5a0   :  { %1022 = vmatpush3.bf16.msra.mxu1 %v1092_v57 }
 0x656   :  { %v950_v58 = vpop.f32.mrb[4].mxu1  ;;  %v972_v59 = vpop.f32.mrb[12].mxu0 }
 0x657   :  { %v951_v61 = vpop.f32.mrb[5].mxu1  ;;  %v973_v62 = vpop.f32.mrb[13].mxu0 }
 0x658   :  { %v952_v63 = vadd.f32 %v951_v61, %v950_v58  ;;  %v974_v0 = vadd.f32 %v973_v62, %v972_v59  ;;  %v953_v2 = vpop.f32.mrb[6].mxu1  ;;  %v975_v3 = vpop.f32.mrb[14].mxu0 }
 0x659   :  { %v954_v4 = vpop.f32.mrb[7].mxu1  ;;  %v976_v5 = vpop.f32.mrb[15].mxu0 }
 0x65a   :  { %v689_v1 = vadd.f32 %v952_v63, %v884_v60 }
 0x65c   :  { %v729_v6 = vadd.f32 %v974_v0, %v689_v1 }
 0x65e   :  { %v734_v7 = vmax.f32 %v729_v6, 0.0 }
 0x660   :  { %v735_v8 = vpack.c.bf16 %v734_v7, %v734_v7 }
 0x662   :  { %1024 = vmatmul.mubr.bf16.vlgmr.msra.gmra.mrb[8].mxu1 %v735_v8 }
 0x735   :  { %v841_v10 = vpop.f32.mrb[8].mxu1 }
 0x736   :  { %v842_v11 = vadd.f32 %v917_v9, %v841_v10  ;;  %v1025_v12 = vpop.f32.mrb[9].mxu1 }
 0x737   :  { %v844_v13 = vpop.f32.mrb[10].mxu1 }
 0x738   :  { %847 = vst [vmem:[#allocation2] sm:$0xff] %v842_v11  ;;  %v1026_v14 = vpop.f32.mrb[11].mxu1 }
 0x739   :  { %852 = vsyncadd [#allocation3], 96  ;;  %s1130_s8 = smov [#allocation2]  }
 0x73a   :  { %s853_s3 = sshll.u32 %s1130_s8, 4  ;;  %s854_s3 = int_to_ptr.vmem [resolvable:$true] %s853_s3 }
 0x73b   :  { %s1101_s15 = scalar_lea.vmem %s854_s3, 32  ;;  %s1105_s16 = scalar_lea.vmem %s854_s3, 128 }
 0x73c   :  { %p1102_p0 = scmp.ne.s32.totalorder %s854_s3, %s1101_s15  ;;  %p1106_p1 = scmp.lt.s32.totalorder %s854_s3, %s854_s3 }
 0x73d   :  { %p1107_p2 = scmp.lt.s32.totalorder %s1105_s16, %s1101_s15 }
 0x73f   :  { %p1108_p3 = por %p1107_p2, %p1106_p1 }
 0x741   :  { %p1109_p4 = pnand %p1108_p3, %p1102_p0 }
 0x743   :  { %1112 = shalt.err (!%p1109_p4)
}
 0x744   :  { %s1113_s12 = scalar_lea.hbm %s1423_s11, 32 }
 0x745   :  { %p1114_p5 = scmp.ne.s32.totalorder %s1423_s11, %s1113_s12  ;;  %p1117_p6 = scmp.lt.u32.totalorder %s1113_s12, %s1423_s11 }
 0x747   :  { %p1119_p7 = pnand %p1117_p6, %p1114_p5 }
 0x749   :  { %1122 = shalt.err (!%p1119_p7)
}
 0x74a   :  { %s1131_s7 = smov 32   ;;  %s1132_s20 = smov 2  }
 0x74b   :  { %859 = dma.vmem_to_hbm [thread:$0]  %s854_s3, 32, %s1423_s11, [#allocation3], %s1131_s7, %s1131_s7, %s1132_s20  }
 0x74c   :  { %1123 = dma.done.wait [#allocation3], 128  }
 0x74d   :  { %1124 = vsyncadd [#allocation3], 4294967168 }
 0x74e   :  { %863 = vsyncpa [#allocation3], 1 }

</bundles_post_ra>
